<compile_context>
chip_gen: v6e
topology: v6e:2x2x1
jax: 0.10.0
libtpu: 0.0.40
codegen_flags: <defaults>
</compile_context>

<pallas_src>
import jax
import jax.numpy as jnp
from jax.experimental import pallas as pl
from jax.experimental.pallas import tpu as pltpu

_MIB = 1024 * 1024
_LANE = 128


def _round_up(x, m):
    return ((x + m - 1) // m) * m


def _sublane_align(dtype):
    # Sub-32-bit dtypes pack along sublanes: 8 rows for f32, 16 for bf16, 32 for int8/fp8.
    return max(8, 32 // jnp.dtype(dtype).itemsize)


def _vmem_budget_bytes():
    """Per-generation usable VMEM budget for the pipelined working set."""
    try:
        cap = int(pltpu.get_tpu_info().vmem_capacity_bytes)
    except Exception:
        cap = 64 * _MIB  # conservative default (v7x per-core VMEM)
    # ~70% of physical, capped: ~45 MiB on v7x (64 MiB), ~90 MiB on v5e/v6e (128 MiB).
    return min(int(cap * 0.7), 96 * _MIB)


def _vmem_footprint(tm, tn, tk, in_size, out_size, *, use_acc, has_bias, w_buffers):
    f = 2 * tm * tk * in_size            # x tile, double-buffered
    f += w_buffers * tk * tn * in_size   # W tile, double (or triple) buffered
    f += 2 * tm * tn * out_size          # output tile, double-buffered
    if use_acc:
        f += tm * tn * 4                 # f32 accumulator scratch
    if has_bias:
        f += 2 * tn * 4                  # bias tile (tiny)
    return f


def _choose_tiles(M, N, K, in_dtype, out_dtype, *, use_acc, has_bias, w_buffers, budget):
    in_size = jnp.dtype(in_dtype).itemsize
    out_size = jnp.dtype(out_dtype).itemsize
    sub = _sublane_align(in_dtype)

    if M <= 256:
        # Decode-like regime (few rows): weight-HBM-bound.  Keep tm at the
        # sublane-aligned padded M and spend VMEM on fat N/K tiles so the
        # weight DMA streams at full HBM efficiency.
        tm = _round_up(M, sub)
        tn_pref, tk_pref = 1024, 2048
    else:
        # Throughput regime: 512-class tiles (multiples of 256 keep the
        # v6e/v7x 256x256 MXU passes full); larger K tile for narrow dtypes.
        tm = 512 if M >= 512 else _round_up(M, sub)
        tn_pref = 512
        tk_pref = 1024 if in_size >= 4 else 2048

    tn = tn_pref if N >= tn_pref else _round_up(N, _LANE)
    tk = tk_pref if K >= tk_pref else _round_up(K, _LANE)

    def fp(tm_, tn_, tk_):
        return _vmem_footprint(tm_, tn_, tk_, in_size, out_size,
                               use_acc=use_acc, has_bias=has_bias,
                               w_buffers=w_buffers)

    # Shrink (rarely needed with these defaults) until the pipelined footprint
    # fits the per-generation VMEM budget, preserving (sub,128) alignment.
    while fp(tm, tn, tk) > budget:
        if tk > _LANE and tk % (2 * _LANE) == 0:
            tk //= 2
        elif tn > _LANE and tn % (2 * _LANE) == 0:
            tn //= 2
        elif tm > sub and tm % (2 * sub) == 0:
            tm //= 2
        else:
            break

    # v7x megacore: the "parallel" grid axes feed the two TensorCores.  If both
    # collapse to a single tile, split N so the second core has work (only
    # triggers for small grids, so the extra x re-read is negligible).
    if tm >= M and tn >= N and tn >= 512 and tn % 256 == 0:
        tn //= 2

    return tm, tn, tk


def _make_linear_kernel(has_bias, acc_in_out, precision):
    """Build the kernel body.  acc_in_out: accumulate directly in the (f32) output."""

    def mm(x_ref, w_ref):
        return jnp.dot(x_ref[...], w_ref[...],
                       preferred_element_type=jnp.float32,
                       precision=precision)

    if acc_in_out and has_bias:
        def kernel(x_ref, w_ref, b_ref, o_ref):
            k = pl.program_id(2)

            @pl.when(k == 0)
            def _():
                # Init the resident output block with the bias (saves a final pass).
                o_ref[...] = jnp.zeros_like(o_ref) + b_ref[...].astype(o_ref.dtype)

            o_ref[...] += mm(x_ref, w_ref)

    elif acc_in_out:
        def kernel(x_ref, w_ref, o_ref):
            k = pl.program_id(2)

            @pl.when(k == 0)
            def _():
                o_ref[...] = jnp.zeros_like(o_ref)

            o_ref[...] += mm(x_ref, w_ref)

    elif has_bias:
        def kernel(x_ref, w_ref, b_ref, o_ref, acc_ref):
            k = pl.program_id(2)

            @pl.when(k == 0)
            def _():
                acc_ref[...] = jnp.zeros_like(acc_ref)

            acc_ref[...] += mm(x_ref, w_ref)

            @pl.when(k == pl.num_programs(2) - 1)
            def _():
                o_ref[...] = (acc_ref[...]
                              + b_ref[...].astype(jnp.float32)).astype(o_ref.dtype)

    else:
        def kernel(x_ref, w_ref, o_ref, acc_ref):
            k = pl.program_id(2)

            @pl.when(k == 0)
            def _():
                acc_ref[...] = jnp.zeros_like(acc_ref)

            acc_ref[...] += mm(x_ref, w_ref)

            @pl.when(k == pl.num_programs(2) - 1)
            def _():
                o_ref[...] = acc_ref[...].astype(o_ref.dtype)

    return kernel


def prepare_weight(weight):
    """One-time re-layout of a PyTorch (dim_out, dim_in) weight to (dim_in, dim_out).

    Do this once at parameter-init time so every forward call feeds the MXU a
    standard (tk, tn) rhs tile with no per-call HBM transpose.
    """
    return jnp.asarray(weight).T


def pallas_linear(x, weight, bias=None, *, weight_layout="out_in",
                  compute_dtype=None, precision=None, w_buffers=2):
    """PyTorch nn.Linear forward: y = x @ W^T + b.

    x: (..., dim_in)
    weight: (dim_out, dim_in) if weight_layout == "out_in" (PyTorch layout), or
            (dim_in, dim_out) if weight_layout == "in_out" (pre-transposed, preferred).
    bias: (dim_out,) or None.
    compute_dtype: optional narrower matmul dtype (e.g. jnp.bfloat16); accumulation
                   stays f32 and the output keeps x.dtype.
    w_buffers: set to 3 to triple-buffer the weight stream (useful on v7x).
    """
    x = jnp.asarray(x)
    weight = jnp.asarray(weight)
    out_dtype = x.dtype

    if weight_layout == "out_in":
        dim_out, dim_in = weight.shape
        # Per-call transpose (compat path).  For persistent parameters, call
        # prepare_weight() once and pass weight_layout="in_out" instead.
        w_kn = weight.T
    elif weight_layout == "in_out":
        dim_in, dim_out = weight.shape
        w_kn = weight
    else:
        raise ValueError("weight_layout must be 'out_in' or 'in_out'")

    *lead, xk = x.shape
    assert xk == dim_in, "x last dim must equal dim_in"
    M = 1
    for d in lead:
        M *= d
    N, K = dim_out, dim_in

    in_dtype = jnp.dtype(compute_dtype) if compute_dtype is not None else x.dtype
    x2d = x.reshape(M, K)
    if x2d.dtype != in_dtype:
        x2d = x2d.astype(in_dtype)
    if w_kn.dtype != in_dtype:
        w_kn = w_kn.astype(in_dtype)

    has_bias = bias is not None
    acc_in_out = jnp.dtype(out_dtype) == jnp.dtype(jnp.float32)

    budget = _vmem_budget_bytes()
    tm, tn, tk = _choose_tiles(M, N, K, in_dtype, out_dtype,
                               use_acc=not acc_in_out, has_bias=has_bias,
                               w_buffers=w_buffers, budget=budget)

    M_pad = _round_up(M, tm)
    N_pad = _round_up(N, tn)
    K_pad = _round_up(K, tk)

    # Pad only when needed (each pad is an extra HBM pass outside the kernel).
    if (M_pad, K_pad) != (M, K):
        x2d = jnp.pad(x2d, ((0, M_pad - M), (0, K_pad - K)))
    if (K_pad, N_pad) != (K, N):
        w_kn = jnp.pad(w_kn, ((0, K_pad - K), (0, N_pad - N)))

    grid = (M_pad // tm, N_pad // tn, K_pad // tk)
    gm, gn, gk = grid

    x_spec = pl.BlockSpec((tm, tk), lambda i, j, k: (i, k))
    if w_buffers > 2:
        w_spec = pl.BlockSpec((tk, tn), lambda i, j, k: (k, j),
                              pipeline_mode=pl.Buffered(w_buffers))
    else:
        w_spec = pl.BlockSpec((tk, tn), lambda i, j, k: (k, j))
    o_spec = pl.BlockSpec((tm, tn), lambda i, j, k: (i, j))

    in_specs = [x_spec, w_spec]
    operands = [x2d, w_kn]
    if has_bias:
        b2d = jnp.asarray(bias).reshape(1, N)
        if N_pad != N:
            b2d = jnp.pad(b2d, ((0, 0), (0, N_pad - N)))
        in_specs.append(pl.BlockSpec((1, tn), lambda i, j, k: (0, j)))
        operands.append(b2d)

    scratch = () if acc_in_out else (pltpu.VMEM((tm, tn), jnp.float32),)

    in_size = jnp.dtype(in_dtype).itemsize
    out_size = jnp.dtype(out_dtype).itemsize
    footprint = _vmem_footprint(tm, tn, tk, in_size, out_size,
                                use_acc=not acc_in_out, has_bias=has_bias,
                                w_buffers=w_buffers)
    vmem_limit = int(min(budget + 16 * _MIB, max(footprint + 8 * _MIB, 32 * _MIB)))

    # bytes_accessed accounts for re-streaming: x is read once per N tile, W once per M tile.
    cost = pl.CostEstimate(
        flops=2 * M_pad * N_pad * K_pad,
        transcendentals=0,
        bytes_accessed=(in_size * M_pad * K_pad * gn
                        + in_size * K_pad * N_pad * gm
                        + (4 * N_pad if has_bias else 0)
                        + out_size * M_pad * N_pad),
    )

    out = pl.pallas_call(
        _make_linear_kernel(has_bias, acc_in_out, precision),
        out_shape=jax.ShapeDtypeStruct((M_pad, N_pad), out_dtype),
        grid_spec=pltpu.PrefetchScalarGridSpec(
            num_scalar_prefetch=0,
            grid=grid,
            in_specs=in_specs,
            out_specs=o_spec,
            scratch_shapes=scratch,
        ),
        compiler_params=pltpu.CompilerParams(
            dimension_semantics=("parallel", "parallel", "arbitrary"),
            vmem_limit_bytes=vmem_limit,
        ),
        cost_estimate=cost,
    )(*operands)

    out = out[:M, :N]
    return out.reshape(*lead, N)


def init_linear_params(key, dim_in, dim_out, bias=True, dtype=jnp.float32):
    """Matches the module: xavier_normal_ weight, PyTorch-default uniform bias."""
    k_w, k_b = jax.random.split(key)
    xavier_std = (2.0 / (dim_in + dim_out)) ** 0.5
    weight = xavier_std * jax.random.normal(k_w, (dim_out, dim_in), dtype=dtype)
    if bias:
        bound = 1.0 / (dim_in ** 0.5)
        b = jax.random.uniform(k_b, (dim_out,), dtype=dtype, minval=-bound, maxval=bound)
    else:
        b = None
    return weight, b


if __name__ == "__main__":
    key = jax.random.PRNGKey(0)
    k_x, k_p = jax.random.split(key)

    batch, seq, dim_in, dim_out = 2, 8, 32, 64
    x = jax.random.normal(k_x, (batch, seq, dim_in), dtype=jnp.float32)
    weight, bias = init_linear_params(k_p, dim_in, dim_out, bias=True)

    y_ref = x @ weight.T + bias

    # 1) PyTorch-layout weight (compat path), f32, with bias.
    y = pallas_linear(x, weight, bias)
    jax.block_until_ready(y)
    assert y.shape == (batch, seq, dim_out)
    assert jnp.allclose(y, y_ref, atol=1e-4, rtol=1e-4)

    # 2) Weight pre-transposed once (preferred for persistent parameters).
    w_t = prepare_weight(weight)
    y2 = pallas_linear(x, w_t, bias, weight_layout="in_out")
    jax.block_until_ready(y2)
    assert jnp.allclose(y2, y_ref, atol=1e-4, rtol=1e-4)

    # 3) No-bias path.
    y_nb = pallas_linear(x, weight, None)
    jax.block_until_ready(y_nb)
    assert jnp.allclose(y_nb, x @ weight.T, atol=1e-4, rtol=1e-4)

    # 4) bf16 compute with f32 output (direct f32 accumulation in the output block).
    y_bf = pallas_linear(x, weight, bias, compute_dtype=jnp.bfloat16)
    jax.block_until_ready(y_bf)
    assert jnp.allclose(y_bf, y_ref, atol=5e-2, rtol=5e-2)

    # 5) Fully bf16 I/O (exercises the f32-scratch accumulator + final cast path).
    y_bb = pallas_linear(x.astype(jnp.bfloat16), weight.astype(jnp.bfloat16),
                         bias.astype(jnp.bfloat16))
    jax.block_until_ready(y_bb)
    assert jnp.allclose(y_bb.astype(jnp.float32), y_ref, atol=5e-2, rtol=5e-2)

    print("KERNEL_OK")
</pallas_src>

<mosaic_0001>
module attributes {stable_mosaic.version = 11 : i64} {
  func.func @kernel(%arg0: i32, %arg1: i32, %arg2: i32, %arg3: memref<16x128xf32, #tpu.memory_space<vmem>>, %arg4: memref<128x128xf32, #tpu.memory_space<vmem>>, %arg5: memref<1x128xf32, #tpu.memory_space<vmem>>, %arg6: memref<16x128xf32, #tpu.memory_space<vmem>>) attributes {dimension_semantics = [#tpu.dimension_semantics<parallel>, #tpu.dimension_semantics<parallel>, #tpu.dimension_semantics<arbitrary>], iteration_bounds = array<i64: 1, 1, 1>, scalar_prefetch = 0 : i64, scratch_operands = 0 : i64, tpu.core_type = #tpu.core_type<tc>, window_params = [{transform_indices = @transform_0, window_bounds = array<i64: 16, 128>}, {transform_indices = @transform_1, window_bounds = array<i64: 128, 128>}, {transform_indices = @transform_2, window_bounds = array<i64: 1, 128>}, {transform_indices = @transform_3, window_bounds = array<i64: 16, 128>}]} {
    %c0_i32 = arith.constant 0 : i32
    %0 = arith.cmpi eq, %arg2, %c0_i32 : i32
    %1 = arith.extui %0 : i1 to i32
    %c0_i32_0 = arith.constant 0 : i32
    %2 = arith.cmpi ne, %1, %c0_i32_0 : i32
    scf.if %2 {
      %cst_8 = arith.constant 0.000000e+00 : f32
      %9 = vector.broadcast %cst_8 : f32 to vector<16x128xf32>
      %c0_9 = arith.constant 0 : index
      %c0_10 = arith.constant 0 : index
      %10 = vector.load %arg5[%c0_9, %c0_10] : memref<1x128xf32, #tpu.memory_space<vmem>>, vector<1x128xf32>
      %11 = vector.broadcast %10 : vector<1x128xf32> to vector<16x128xf32>
      %12 = arith.addf %9, %11 : vector<16x128xf32>
      %c0_11 = arith.constant 0 : index
      %c0_12 = arith.constant 0 : index
      %13 = vector.load %arg6[%c0_11, %c0_12] : memref<16x128xf32, #tpu.memory_space<vmem>>, vector<16x128xf32>
      tpu.vector_store %arg6[%c0_11, %c0_12], %12 {strides = array<i32>} : memref<16x128xf32, #tpu.memory_space<vmem>>, vector<16x128xf32>,
    } else {
    }
    %c0 = arith.constant 0 : index
    %c0_1 = arith.constant 0 : index
    %3 = vector.load %arg6[%c0, %c0_1] : memref<16x128xf32, #tpu.memory_space<vmem>>, vector<16x128xf32>
    %c0_2 = arith.constant 0 : index
    %c0_3 = arith.constant 0 : index
    %4 = vector.load %arg3[%c0_2, %c0_3] : memref<16x128xf32, #tpu.memory_space<vmem>>, vector<16x128xf32>
    %c0_4 = arith.constant 0 : index
    %c0_5 = arith.constant 0 : index
    %5 = vector.load %arg4[%c0_4, %c0_5] : memref<128x128xf32, #tpu.memory_space<vmem>>, vector<128x128xf32>
    %cst = arith.constant dense<0.000000e+00> : vector<16x128xf32>
    %6 = tpu.matmul %4, %5, %cst {dimension_numbers = #tpu.dot_dimension_numbers<[1], [0], [0], [1], [0, 0, 1, 1], [], []>} : vector<16x128xf32>, vector<128x128xf32>, vector<16x128xf32> -> vector<16x128xf32>
    %7 = arith.addf %3, %6 : vector<16x128xf32>
    %c0_6 = arith.constant 0 : index
    %c0_7 = arith.constant 0 : index
    %8 = vector.load %arg6[%c0_6, %c0_7] : memref<16x128xf32, #tpu.memory_space<vmem>>, vector<16x128xf32>
    tpu.vector_store %arg6[%c0_6, %c0_7], %7 {strides = array<i32>} : memref<16x128xf32, #tpu.memory_space<vmem>>, vector<16x128xf32>,
    return
  }
  func.func @transform_0(%arg0: i32, %arg1: i32, %arg2: i32) -> (i32, i32) {
    %c0_i32 = arith.constant 0 : i32
    return %arg0, %arg2 : i32, i32
  }
  func.func @transform_1(%arg0: i32, %arg1: i32, %arg2: i32) -> (i32, i32) {
    %c0_i32 = arith.constant 0 : i32
    return %arg2, %arg1 : i32, i32
  }
  func.func @transform_2(%arg0: i32, %arg1: i32, %arg2: i32) -> (i32, i32) {
    %c0_i32 = arith.constant 0 : i32
    %c0_i32_0 = arith.constant 0 : i32
    return %c0_i32, %arg1 : i32, i32
  }
  func.func @transform_3(%arg0: i32, %arg1: i32, %arg2: i32) -> (i32, i32) {
    %c0_i32 = arith.constant 0 : i32
    return %arg0, %arg1 : i32, i32
  }
}

</mosaic_0001>

<bundles_post_ra>
// kernel: tpu_custom_call.1
= control target key start
LH: loop header
LB: loop body
LE: loop exit
PB: predicated region body
PF: predicated region fallthrough
CT: control target
= control target key end

     0   :  { %8 = vsyncpa [#allocation3], 0  ;;  %s345_s0 = inlined_call_operand.hbm [shape: f32[16,128], index: 0, kind: input, shape index: {}]   ;;  %s346_s1 = inlined_call_operand.hbm [shape: f32[128,128], index: 1, kind: input, shape index: {}]   ;;  %s347_s2 = inlined_call_operand.vmem [shape: f32[1,128], index: 2, kind: input, shape index: {}]   ;;  %s348_s3 = inlined_call_operand.hbm [shape: f32[16,128], index: 3, kind: output, shape index: {}]  }
   0x1   :  { %9 = vsyncpa [#allocation6], 0 }
   0x2   :  { %10 = vsyncpa [#allocation4], 0  ;;  %s299_s12 = smov [#allocation2]  }
   0x3   :  { %s16_s13 = sshll.u32 %s299_s12, 4  ;;  %s17_s13 = int_to_ptr.vmem [resolvable:$true] %s16_s13 }
   0x4   :  { %s241_s14 = scalar_lea.vmem %s17_s13, 256  ;;  %p246_p1 = scmp.lt.s32.totalorder %s17_s13, %s17_s13 }
   0x5   :  { %p242_p0 = scmp.ne.s32.totalorder %s17_s13, %s241_s14  ;;  %p247_p2 = scmp.lt.s32.totalorder %s241_s14, %s241_s14 }
   0x7   :  { %p248_p3 = por %p247_p2, %p246_p1 }
   0x9   :  { %p249_p4 = pnand %p248_p3, %p242_p0 }
   0xb   :  { %252 = shalt.err (!%p249_p4)
}
   0xc   :  { %s300_s15 = smov 128   ;;  %s301_s16 = smov 8  }
   0xd   :  { %22 = dma.hbm_to_vmem [thread:$0]  %s345_s0, 256, %s17_s13, [#allocation3], %s300_s15, %s300_s15, %s301_s16  }
   0xe   :  { %s302_s19 = smov [#allocation5]  }
   0xf   :  { %s28_s20 = sshll.u32 %s302_s19, 4  ;;  %s29_s20 = int_to_ptr.vmem [resolvable:$true] %s28_s20 }
  0x10   :  { %s261_s21 = scalar_lea.vmem %s29_s20, 2048  ;;  %p266_p6 = scmp.lt.s32.totalorder %s29_s20, %s29_s20 }
  0x11   :  { %p262_p5 = scmp.ne.s32.totalorder %s29_s20, %s261_s21  ;;  %p267_p7 = scmp.lt.s32.totalorder %s261_s21, %s261_s21 }
  0x13   :  { %p268_p8 = por %p267_p7, %p266_p6 }
  0x15   :  { %p269_p9 = pnand %p268_p8, %p262_p5 }
  0x17   :  { %272 = shalt.err (!%p269_p9)
}
  0x18   :  { %34 = dma.hbm_to_vmem [thread:$0]  %s346_s1, 2048, %s29_s20, [#allocation6], %s300_s15, %s300_s15, %s301_s16  }
  0x19   :  { %293 = dma.done.wait [#allocation3], 256  }
  0x1a   :  { %294 = vsyncadd [#allocation3], 4294967040 }
  0x1b   :  { %295 = dma.done.wait [#allocation6], 2048  }
  0x1c   :  { %296 = vsyncadd [#allocation6], 4294965248  ;;  %v76_v0 = vld [vmem:[#allocation5 + $0x78] sm:$0xff]  ;;  %v75_v1 = vld [vmem:[#allocation5 + $0x70] sm:$0xff]  ;;  %s303_s24 = smov [#allocation7]  }
  0x1d   :  { %193 = vmatprep.subr.mxu0 %v76_v0  ;;  %v74_v2 = vld [vmem:[#allocation5 + $0x68] sm:$0xff]  ;;  %v73_v3 = vld [vmem:[#allocation5 + $0x60] sm:$0xff]  ;;  %v59_v4 = vld [vmem:[#allocation2] sm:$0xff]  ;;  %s161_s25 = sshll.u32 %s303_s24, 4  ;;  %s162_s25 = int_to_ptr.vmem [resolvable:$true] %s161_s25 }
  0x1e   :  { %194 = vmatpush3.msra.mxu0 %v76_v0  ;;  %v72_v5 = vld [vmem:[#allocation5 + $0x58] sm:$0xff]  ;;  %225 = vmatprep.mubr.f32.mxu0 %v59_v4  ;;  %v71_v6 = vld [vmem:[#allocation5 + $0x50] sm:$0xff]  ;;  %v70_v7 = vld [vmem:[#allocation5 + $0x48] sm:$0xff]  ;;  %s273_s26 = scalar_lea.vmem %s162_s25, 256  ;;  %p278_p11 = scmp.lt.s32.totalorder %s162_s25, %s162_s25 }
  0x1f   :  { %195 = vmatprep.subr.mxu0 %v75_v1  ;;  %v69_v8 = vld [vmem:[#allocation5 + $0x40] sm:$0xff]  ;;  %v68_v9 = vld [vmem:[#allocation5 + $0x38] sm:$0xff]  ;;  %v67_v10 = vld [vmem:[#allocation5 + $0x30] sm:$0xff]  ;;  %p274_p10 = scmp.ne.s32.totalorder %s162_s25, %s273_s26  ;;  %p279_p12 = scmp.lt.s32.totalorder %s273_s26, %s273_s26 }
  0x20   :  { %196 = vmatpush3.msra.mxu0 %v75_v1  ;;  %v66_v11 = vld [vmem:[#allocation5 + $0x28] sm:$0xff]  ;;  %v65_v12 = vld [vmem:[#allocation5 + $0x20] sm:$0xff]  ;;  %v64_v13 = vld [vmem:[#allocation5 + $0x18] sm:$0xff] }
  0x21   :  { %197 = vmatprep.subr.mxu0 %v74_v2  ;;  %v63_v14 = vld [vmem:[#allocation5 + $0x10] sm:$0xff]  ;;  %v62_v15 = vld [vmem:[#allocation5 + $0x8] sm:$0xff]  ;;  %v61_v16 = vld [vmem:[#allocation5] sm:$0xff]  ;;  %p280_p13 = por %p279_p12, %p278_p11 }
  0x22   :  { %198 = vmatpush3.msra.mxu0 %v74_v2  ;;  %v60_v17 = vld [vmem:[#allocation2 + $0x8] sm:$0xff]  ;;  %v174_v18 = vld [vmem:[%s347_s2] ss:$0 sm:$0xff] }
  0x23   :  { %199 = vmatprep.subr.mxu0 %v73_v3  ;;  %p281_p0 = pnand %p280_p13, %p274_p10 }
  0x24   :  { %200 = vmatpush3.msra.mxu0 %v73_v3 }
  0x25   :  { %201 = vmatprep.subr.mxu0 %v72_v5 }
  0x26   :  { %202 = vmatpush3.msra.mxu0 %v72_v5 }
  0x27   :  { %203 = vmatprep.subr.mxu0 %v71_v6 }
  0x28   :  { %204 = vmatpush3.msra.mxu0 %v71_v6 }
  0x29   :  { %205 = vmatprep.subr.mxu0 %v70_v7 }
  0x2a   :  { %206 = vmatpush3.msra.mxu0 %v70_v7 }
  0x2b   :  { %207 = vmatprep.subr.mxu0 %v69_v8 }
  0x2c   :  { %208 = vmatpush3.msra.mxu0 %v69_v8 }
  0x2d   :  { %209 = vmatprep.subr.mxu0 %v68_v9 }
  0x2e   :  { %210 = vmatpush3.msra.mxu0 %v68_v9 }
  0x2f   :  { %211 = vmatprep.subr.mxu0 %v67_v10 }
  0x30   :  { %212 = vmatpush3.msra.mxu0 %v67_v10 }
  0x31   :  { %213 = vmatprep.subr.mxu0 %v66_v11 }
  0x32   :  { %214 = vmatpush3.msra.mxu0 %v66_v11 }
  0x33   :  { %215 = vmatprep.subr.mxu0 %v65_v12 }
  0x34   :  { %216 = vmatpush3.msra.mxu0 %v65_v12 }
  0x35   :  { %217 = vmatprep.subr.mxu0 %v64_v13 }
  0x36   :  { %218 = vmatpush3.msra.mxu0 %v64_v13 }
  0x37   :  { %219 = vmatprep.subr.mxu0 %v63_v14 }
  0x38   :  { %220 = vmatpush3.msra.mxu0 %v63_v14 }
  0x39   :  { %221 = vmatprep.subr.mxu0 %v62_v15 }
  0x3a   :  { %222 = vmatpush3.msra.mxu0 %v62_v15 }
  0x3b   :  { %223 = vmatprep.subr.mxu0 %v61_v16 }
  0x3c   :  { %224 = vmatpush3.msra.mxu0 %v61_v16 }
  0x3d   :  { %226 = vmatmul.mubr.f32.vlgmr.msra.gmra.mxu0 %v60_v17 }
  0xfd   :  { %v227_v19 = vpop.f32.mrf.mxu0 }
  0xfe   :  { %v153_v20 = vadd.f32 %v227_v19, %v174_v18 }
  0xff   :  { %v143_v21 = vpop.f32.mrf.mxu0 }
 0x100   :  { %155 = vst [vmem:[#allocation7 + $0x8] sm:$0xff] %v153_v20  ;;  %v152_v22 = vadd.f32 %v174_v18, %v143_v21 }
 0x102   :  { %154 = vst [vmem:[#allocation7] sm:$0xff] %v152_v22 }
 0x103   :  { %284 = shalt.err (!%p281_p0)
}
 0x104   :  { %167 = dma.vmem_to_hbm [thread:$0]  %s162_s25, 256, %s348_s3, [#allocation4], %s300_s15, %s300_s15, %s301_s16  }
 0x105   :  { %297 = dma.done.wait [#allocation4], 256  }
 0x106   :  { %298 = vsyncadd [#allocation4], 4294967040 }
 0x107   :  { %171 = vsyncpa [#allocation3], 1 }
 0x108   :  { %172 = vsyncpa [#allocation6], 1 }
 0x109   :  { %173 = vsyncpa [#allocation4], 1 }

</bundles_post_ra>
